<compile_context>
chip_gen: v7x
topology: tpu7x:2x2x1
jax: 0.10.0
libtpu: 0.0.40
codegen_flags: <defaults>
</compile_context>

<pallas_src>
import jax
import jax.numpy as jnp
from jax import lax
from jax.experimental import pallas as pl
from jax.experimental.pallas import tpu as pltpu

LANE = 128  # TPU lane width


def _round_up(x, m):
    return (x + m - 1) // m * m


# ----------------------------------------------------------------------------
# Pallas kernel: fused Linear -> Linear -> Sigmoid on one batch tile.
# ----------------------------------------------------------------------------
def discriminator_kernel(x_ref, w1_ref, b1_ref, w2_ref, b2_ref, o_ref):
    """x_ref  : (tb, D)  flattened features (input dtype, cast in-kernel)
    w1_ref : (D, D)   first linear weight, (in, out) layout, compute dtype
    b1_ref : (1, D)   first linear bias (f32)
    w2_ref : (1, D)   second linear weight as a row vector (f32)
    b2_ref : (1,)     second linear bias, scalar in SMEM (f32)
    o_ref  : (1, tb)  sigmoid output, batch on the lane axis (f32)
    """
    # First linear on the MXU: bf16 inputs, f32 accumulation.
    x = x_ref[...].astype(w1_ref.dtype)
    h = jnp.dot(x, w1_ref[...], preferred_element_type=jnp.float32) + b1_ref[...]

    # Second linear with batch on the lane axis:
    #   (1, D) . (tb, D)^T -> (1, tb)   (contract last dim with last dim).
    logits = lax.dot_general(
        w2_ref[...], h,
        dimension_numbers=(((1,), (1,)), ((), ())),
        preferred_element_type=jnp.float32,
    ) + b2_ref[0]

    # Numerically stable sigmoid (no exp overflow for very negative logits).
    z = jnp.exp(-jnp.abs(logits))
    r = 1.0 / (1.0 + z)
    o_ref[...] = jnp.where(logits >= 0.0, r, z * r)


# ----------------------------------------------------------------------------
# Batch-tile selection
# ----------------------------------------------------------------------------
def _choose_batch_tile(B, D, x_itemsize, max_batch_tile):
    if B <= 256:
        return B  # single block: block_shape == full array dims is always legal
    # Cap the (double-buffered) x tile at ~4 MiB so resident W1 + tiles stay inside
    # every generation's default scoped-VMEM budget (v5e 16 MiB is the tightest).
    vmem_rows = max(LANE, (4 * 1024 * 1024) // max(1, D * x_itemsize))
    vmem_rows = max(LANE, (vmem_rows // LANE) * LANE)
    # >= 2 balanced grid steps so both v7x TensorCores get work; lane-aligned tiles
    # keep the (1, tb) output stores dense.
    half = _round_up(pl.cdiv(B, 2), LANE)
    return min(max_batch_tile, vmem_rows, half)


# ----------------------------------------------------------------------------
# Wrapper
# ----------------------------------------------------------------------------
def discriminator_forward(feature, prepared_params, *, max_batch_tile=2048):
    """feature: (B, ...) -> (B, 1) in (0, 1). Matches Discriminator.forward."""
    w1, b1r, w2r, b2s = prepared_params
    B = feature.shape[0]
    x = feature.reshape(B, -1)                  # feature.flatten(1); dtype cast in-kernel
    D = x.shape[1]
    assert w1.shape == (D, D), (w1.shape, D)

    tb = _choose_batch_tile(B, D, x.dtype.itemsize, max_batch_tile)
    grid = (pl.cdiv(B, tb),)

    resident = dict(pipeline_mode=pl.Buffered(1))  # constant index_map -> 1 buffer

    out = pl.pallas_call(
        discriminator_kernel,
        out_shape=jax.ShapeDtypeStruct((1, B), jnp.float32),
        grid_spec=pltpu.PrefetchScalarGridSpec(
            num_scalar_prefetch=0,
            grid=grid,
            in_specs=[
                pl.BlockSpec((tb, D), lambda i: (i, 0)),              # x tile (pipelined)
                pl.BlockSpec((D, D), lambda i: (0, 0), **resident),   # W1 (resident)
                pl.BlockSpec((1, D), lambda i: (0, 0), **resident),   # b1 (resident)
                pl.BlockSpec((1, D), lambda i: (0, 0), **resident),   # w2 row (resident)
                pl.BlockSpec(memory_space=pltpu.MemorySpace.SMEM),    # b2 scalar
            ],
            out_specs=pl.BlockSpec((1, tb), lambda i: (0, i)),        # lane-dense output
        ),
        compiler_params=pltpu.CompilerParams(
            dimension_semantics=("parallel",)),
    )(x, w1, b1r, w2r, b2s)

    # (1, B) and (B, 1) share the same flat element order -> cheap reshape.
    return out.reshape(B, 1)


# ----------------------------------------------------------------------------
# Parameter construction / one-time prep
# ----------------------------------------------------------------------------
def make_discriminator_params(latent_dim, key):
    """PyTorch nn.Linear default init; weights kept in (in, out) layout."""
    k1w, k1b, k2w, k2b = jax.random.split(key, 4)
    bound = 1.0 / latent_dim ** 0.5
    w1 = jax.random.uniform(k1w, (latent_dim, latent_dim), jnp.float32, -bound, bound)
    b1 = jax.random.uniform(k1b, (latent_dim,), jnp.float32, -bound, bound)
    w2 = jax.random.uniform(k2w, (latent_dim, 1), jnp.float32, -bound, bound)
    b2 = jax.random.uniform(k2b, (1,), jnp.float32, -bound, bound)
    return (w1, b1, w2, b2)


def prepare_discriminator_params(params, compute_dtype=jnp.bfloat16):
    """One-time (outside the hot path) layout/dtype prep for the kernel."""
    w1, b1, w2, b2 = params
    D = w1.shape[0]
    return (
        w1.astype(compute_dtype),                 # (D, D) MXU input dtype
        b1.reshape(1, D).astype(jnp.float32),     # (1, D)
        w2.reshape(1, D).astype(jnp.float32),     # (1, D) row vector (was (D, 1))
        b2.reshape(1).astype(jnp.float32),        # (1,) scalar for SMEM
    )


# ----------------------------------------------------------------------------
if __name__ == "__main__":
    key = jax.random.PRNGKey(0)
    pkey, xkey, xkey2 = jax.random.split(key, 3)

    latent_dim = 32
    params = make_discriminator_params(latent_dim, pkey)
    prepared = prepare_discriminator_params(params)      # once, outside the step
    fwd = jax.jit(discriminator_forward)

    w1, b1, w2, b2 = params

    def reference(f):
        return jax.nn.sigmoid((f.reshape(f.shape[0], -1) @ w1 + b1) @ w2 + b2)

    # Small batch: single-block path.
    feature = jax.random.normal(xkey, (2, latent_dim), jnp.float32)
    out = jax.block_until_ready(fwd(feature, prepared))
    assert out.shape == (2, 1), out.shape
    assert jnp.all(jnp.isfinite(out))
    assert jnp.all((out > 0.0) & (out < 1.0))
    assert jnp.allclose(out, reference(feature), atol=2e-2, rtol=2e-2)

    # Larger batch: multi-tile grid (2 steps) with a ragged final tile.
    feature2 = jax.random.normal(xkey2, (384, latent_dim), jnp.float32)
    out2 = jax.block_until_ready(fwd(feature2, prepared))
    assert out2.shape == (384, 1), out2.shape
    assert jnp.all(jnp.isfinite(out2))
    assert jnp.all((out2 > 0.0) & (out2 < 1.0))
    assert jnp.allclose(out2, reference(feature2), atol=2e-2, rtol=2e-2)

    print("KERNEL_OK")
</pallas_src>

<mosaic_0001>
module attributes {stable_mosaic.version = 11 : i64} {
  func.func @discriminator_kernel(%arg0: i32, %arg1: memref<2x32xf32, #tpu.memory_space<vmem>>, %arg2: memref<32x32xbf16, #tpu.memory_space<vmem>>, %arg3: memref<1x32xf32, #tpu.memory_space<vmem>>, %arg4: memref<1x32xf32, #tpu.memory_space<vmem>>, %arg5: memref<1xf32, #tpu.memory_space<smem>>, %arg6: memref<1x2xf32, #tpu.memory_space<vmem>>) attributes {dimension_semantics = [#tpu.dimension_semantics<parallel>], iteration_bounds = array<i64: 1>, scalar_prefetch = 0 : i64, scratch_operands = 0 : i64, tpu.core_type = #tpu.core_type<tc>, window_params = [{transform_indices = @transform_0, window_bounds = array<i64: 2, 32>}, {pipeline_mode = #tpu.pipeline_mode<synchronous>, transform_indices = @transform_1, window_bounds = array<i64: 32, 32>}, {pipeline_mode = #tpu.pipeline_mode<synchronous>, transform_indices = @transform_2, window_bounds = array<i64: 1, 32>}, {pipeline_mode = #tpu.pipeline_mode<synchronous>, transform_indices = @transform_3, window_bounds = array<i64: 1, 32>}, {transform_indices = @transform_4, window_bounds = array<i64: 1>}, {transform_indices = @transform_5, window_bounds = array<i64: 1, 2>}]} {
    %c0 = arith.constant 0 : index
    %c0_0 = arith.constant 0 : index
    %0 = vector.load %arg1[%c0, %c0_0] : memref<2x32xf32, #tpu.memory_space<vmem>>, vector<2x32xf32>
    %1 = arith.truncf %0 : vector<2x32xf32> to vector<2x32xbf16>
    %c0_1 = arith.constant 0 : index
    %c0_2 = arith.constant 0 : index
    %2 = vector.load %arg2[%c0_1, %c0_2] : memref<32x32xbf16, #tpu.memory_space<vmem>>, vector<32x32xbf16>
    %cst = arith.constant dense<0.000000e+00> : vector<2x32xf32>
    %3 = tpu.matmul %1, %2, %cst {dimension_numbers = #tpu.dot_dimension_numbers<[1], [0], [0], [1], [0, 0, 1, 1], [], []>} : vector<2x32xbf16>, vector<32x32xbf16>, vector<2x32xf32> -> vector<2x32xf32>
    %c0_3 = arith.constant 0 : index
    %c0_4 = arith.constant 0 : index
    %4 = vector.load %arg3[%c0_3, %c0_4] : memref<1x32xf32, #tpu.memory_space<vmem>>, vector<1x32xf32>
    %5 = vector.broadcast %4 : vector<1x32xf32> to vector<2x32xf32>
    %6 = arith.addf %3, %5 : vector<2x32xf32>
    %c0_5 = arith.constant 0 : index
    %c0_6 = arith.constant 0 : index
    %7 = vector.load %arg4[%c0_5, %c0_6] : memref<1x32xf32, #tpu.memory_space<vmem>>, vector<1x32xf32>
    %cst_7 = arith.constant dense<0.000000e+00> : vector<1x2xf32>
    %8 = tpu.matmul %7, %6, %cst_7 {dimension_numbers = #tpu.dot_dimension_numbers<[1], [1], [0], [0], [0, 0, 1, 0], [], []>} : vector<1x32xf32>, vector<2x32xf32>, vector<1x2xf32> -> vector<1x2xf32>
    %c0_8 = arith.constant 0 : index
    %9 = memref.load %arg5[%c0_8] : memref<1xf32, #tpu.memory_space<smem>>
    %10 = vector.broadcast %9 : f32 to vector<1x2xf32>
    %11 = arith.addf %8, %10 : vector<1x2xf32>
    %12 = math.absf %11 : vector<1x2xf32>
    %cst_9 = arith.constant 0.000000e+00 : f32
    %13 = vector.broadcast %cst_9 : f32 to vector<1x2xf32>
    %14 = arith.subf %13, %12 : vector<1x2xf32>
    %15 = math.exp %14 : vector<1x2xf32>
    %cst_10 = arith.constant 1.000000e+00 : f32
    %16 = vector.broadcast %cst_10 : f32 to vector<1x2xf32>
    %17 = arith.addf %16, %15 : vector<1x2xf32>
    %cst_11 = arith.constant 1.000000e+00 : f32
    %18 = vector.broadcast %cst_11 : f32 to vector<1x2xf32>
    %19 = arith.divf %18, %17 : vector<1x2xf32>
    %cst_12 = arith.constant 0.000000e+00 : f32
    %20 = vector.broadcast %cst_12 : f32 to vector<1x2xf32>
    %21 = arith.cmpf oge, %11, %20 : vector<1x2xf32>
    %22 = arith.mulf %15, %19 : vector<1x2xf32>
    %23 = arith.select %21, %19, %22 : vector<1x2xi1>, vector<1x2xf32>
    %c0_13 = arith.constant 0 : index
    %c0_14 = arith.constant 0 : index
    %24 = vector.load %arg6[%c0_13, %c0_14] : memref<1x2xf32, #tpu.memory_space<vmem>>, vector<1x2xf32>
    tpu.vector_store %arg6[%c0_13, %c0_14], %23 {strides = array<i32>} : memref<1x2xf32, #tpu.memory_space<vmem>>, vector<1x2xf32>,
    return
  }
  func.func @transform_0(%arg0: i32) -> (i32, i32) {
    %c0_i32 = arith.constant 0 : i32
    %c0_i32_0 = arith.constant 0 : i32
    return %arg0, %c0_i32 : i32, i32
  }
  func.func @transform_1(%arg0: i32) -> (i32, i32) {
    %c0_i32 = arith.constant 0 : i32
    %c0_i32_0 = arith.constant 0 : i32
    %c0_i32_1 = arith.constant 0 : i32
    return %c0_i32, %c0_i32_0 : i32, i32
  }
  func.func @transform_2(%arg0: i32) -> (i32, i32) {
    %c0_i32 = arith.constant 0 : i32
    %c0_i32_0 = arith.constant 0 : i32
    %c0_i32_1 = arith.constant 0 : i32
    return %c0_i32, %c0_i32_0 : i32, i32
  }
  func.func @transform_3(%arg0: i32) -> (i32, i32) {
    %c0_i32 = arith.constant 0 : i32
    %c0_i32_0 = arith.constant 0 : i32
    %c0_i32_1 = arith.constant 0 : i32
    return %c0_i32, %c0_i32_0 : i32, i32
  }
  func.func @transform_4(%arg0: i32) -> i32 {
    %c0_i32 = arith.constant 0 : i32
    %c0_i32_0 = arith.constant 0 : i32
    return %c0_i32 : i32
  }
  func.func @transform_5(%arg0: i32) -> (i32, i32) {
    %c0_i32 = arith.constant 0 : i32
    %c0_i32_0 = arith.constant 0 : i32
    return %c0_i32, %arg0 : i32, i32
  }
}

</mosaic_0001>

<bundles_post_ra>
// kernel: discriminator_forward.1
= control target key start
LH: loop header
LB: loop body
LE: loop exit
PB: predicated region body
PF: predicated region fallthrough
CT: control target
= control target key end

     0   :  { %11 = vsyncpa [#allocation4], 0  ;;  %s368_s0 = inlined_call_operand.vmem [shape: f32[2,32], index: 0, kind: input, shape index: {}]   ;;  %s369_s1 = inlined_call_operand.hbm [shape: bf16[32,32], index: 1, kind: input, shape index: {}]   ;;  %s370_s2 = inlined_call_operand.vmem [shape: f32[1,32], index: 2, kind: input, shape index: {}]   ;;  %s371_s3 = inlined_call_operand.vmem [shape: f32[1,32], index: 3, kind: input, shape index: {}]   ;;  %s372_s4 = inlined_call_operand.<no memory space> [shape: f32[1], index: 4, kind: input, shape index: {}]   ;;  %s373_s5 = inlined_call_operand.hbm [shape: f32[1,2], index: 5, kind: output, shape index: {}]  }
   0x1   :  { %12 = vsyncpa [#allocation5], 0  ;;  %s296_s18 = smov [#allocation3]   ;;  %s248_s22 = scalar_lea.hbm %s369_s1, 256 }
   0x2   :  { %s20_s19 = sshll.u32 %s296_s18, 4  ;;  %p249_p0 = scmp.ne.s32.totalorder %s369_s1, %s248_s22  ;;  %s21_s19 = int_to_ptr.vmem [resolvable:$true] %s20_s19 }
   0x3   :  { %p252_p1 = scmp.lt.u32.totalorder %s248_s22, %s369_s1 }
   0x5   :  { %p254_p2 = pnand %p252_p1, %p249_p0 }
   0x7   :  { %257 = shalt.err (!%p254_p2)
}
   0x8   :  { %s258_s27 = scalar_lea.vmem %s21_s19, 256  ;;  %p263_p4 = scmp.lt.s32.totalorder %s21_s19, %s21_s19 }
   0x9   :  { %p259_p3 = scmp.ne.s32.totalorder %s21_s19, %s258_s27  ;;  %p264_p5 = scmp.lt.s32.totalorder %s258_s27, %s258_s27 }
   0xb   :  { %p265_p6 = por %p264_p5, %p263_p4 }
   0xd   :  { %p266_p7 = pnand %p265_p6, %p259_p3 }
   0xf   :  { %269 = shalt.err (!%p266_p7)
}
  0x10   :  { %s297_s28 = smov 64   ;;  %s298_s29 = smov 4  }
  0x11   :  { %26 = dma.hbm_to_vmem [thread:$0]  %s369_s1, 256, %s21_s19, [#allocation4], %s297_s28, %s297_s28, %s298_s29  }
  0x12   :  { %292 = dma.done.wait [#allocation4], 256  }
  0x13   :  { %293 = vsyncadd [#allocation4], 4294967040  ;;  %v299_v0 = vmov 0.0   ;;  %vm300_vm0 = vmmov 0   ;;  %v242_v1 = vld [vmem:[#allocation3] sm:$0xff]   ;;  %v243_v2 = vld [vmem:[#allocation3 + $0x8] sm:$0xff]   ;;  %v108_v12 = vstv %s372_s4 }
  0x14   :  { %223 = vmatprep.subr.bf16.mxu0 %v299_v0  ;;  %227 = vmatprep.mubr.msk.bf16.mxu0 %vm300_vm0, %v299_v0  ;;  %v37_v3 = vld [vmem:[%s368_s0] sm:$0x3]  ;;  %vm62_vm1 = vcmask 261120   ;;  %vm195_vm2 = vcmask 8192  }
  0x15   :  { %231 = vmatprep.subr.mxu1 %v299_v0  ;;  %233 = vmatprep.mubr.msk.f32.mxu1 %vm300_vm0, %v299_v0  ;;  %v38_v4 = vpack.c.bf16 %v37_v3, %v37_v3  ;;  %v212_v5 = vld [vmem:[%s370_s2] ss:$0 sm:$0xff]  ;;  %s301_s2 = smov [#allocation6]  }
  0x16   :  { %224 = vmatpush3.bf16.msra.mxu0 %v242_v1  ;;  %v106_v11 = vld [vmem:[%s371_s3] sm:$0x1]  ;;  %s203_s13 = sshll.u32 %s301_s2, 4  ;;  %s204_s13 = int_to_ptr.vmem [resolvable:$true] %s203_s13 }
  0x17   :  { %225 = vmatprep.subr.bf16.mxu0 %v299_v0  ;;  %s270_s3 = scalar_lea.vmem %s204_s13, 16  ;;  %s274_s4 = scalar_lea.vmem %s204_s13, 32 }
  0x18   :  { %p271_p8 = scmp.ne.s32.totalorder %s204_s13, %s270_s3  ;;  %p275_p9 = scmp.lt.s32.totalorder %s204_s13, %s204_s13 }
  0x19   :  { %p276_p10 = scmp.lt.s32.totalorder %s274_s4, %s270_s3 }
  0x1a   :  { %226 = vmatpush3.bf16.msra.mxu0 %v243_v2 }
  0x1b   :  { %p277_p11 = por %p276_p10, %p275_p9 }
  0x1d   :  { %228 = vmatmul.mubr.msk.bf16.vlgmr.msra.gmra.mrb[0].mxu0 %vm62_vm1, %v38_v4  ;;  %p278_p12 = pnand %p277_p11, %p271_p8 }
  0xf0   :  { %v100_v6 = vpop.f32.mrb[0].mxu0 }
  0xf1   :  { %v101_v7 = vadd.f32 %v212_v5, %v100_v6  ;;  %v229_v8 = vpop.f32.mrb[1].mxu0 }
  0xf2   :  { %v103_v9 = vpop.f32.mrb[2].mxu0 }
  0xf3   :  { %v230_v10 = vpop.f32.mrb[3].mxu0  ;;  %232 = vmatpush3.xpose.msk.msra.mxu1 %vm62_vm1, %v101_v7 }
  0xf6   :  { %234 = vmatmul.mubr.msk.f32.vlgmr.msra.gmra.mrb[0].mxu1 %vm62_vm1, %v106_v11 }
 0x1c9   :  { %v181_v13 = vpop.f32.mrb[0].mxu1 }
 0x1ca   :  { %v182_v14 = vadd.f32 %v181_v13, %v108_v12  ;;  %v235_v15 = vpop.f32.mrb[1].mxu1 }
 0x1cc   :  { %v185_v16 = vand.u32 2147483647, %v182_v14  ;;  %vm192_vm3 = vcmp.ge.f32.partialorder %v182_v14, 0.0 }
 0x1ce   :  { %v186_v17 = vsub.f32 0.0, %v185_v16 }
 0x1d0   :  { %v187_v18 = vmul.f32 1.442695, %v186_v17 }
 0x1d2   :  { %244 = vpow2.f32 %v187_v18 }
 0x1dc   :  { %v245_v19 = vpop.eup %244 }
 0x1dd   :  { %v189_v20 = vadd.f32 1.0, %v245_v19 }
 0x1df   :  { %246 = vrcp.f32 %v189_v20 }
 0x1e9   :  { %v247_v21 = vpop.eup %246 }
 0x1ea   :  { %v193_v22 = vmul.f32 %v247_v21, %v245_v19 }
 0x1ec   :  { %v194_v23 = vsel %vm192_vm3, %v247_v21, %v193_v22 }
 0x1ed   :  { %196 = vst.msk [vmem:[#allocation6] sm:$0x1] %vm195_vm2, %v194_v23 }
 0x1ee   :  { %281 = shalt.err (!%p278_p12)
}
 0x1ef   :  { %s282_s16 = scalar_lea.hbm %s373_s5, 16 }
 0x1f0   :  { %p283_p13 = scmp.ne.s32.totalorder %s373_s5, %s282_s16  ;;  %p286_p0 = scmp.lt.u32.totalorder %s282_s16, %s373_s5 }
 0x1f2   :  { %p288_p1 = pnand %p286_p0, %p283_p13 }
 0x1f4   :  { %291 = shalt.err (!%p288_p1)
}
 0x1f5   :  { %206 = dma.vmem_to_hbm [thread:$0]  %s204_s13, 16, %s373_s5, [#allocation5]  }
 0x1f6   :  { %294 = dma.done.wait [#allocation5], 16  }
 0x1f7   :  { %295 = vsyncadd [#allocation5], 4294967280 }
 0x1f8   :  { %210 = vsyncpa [#allocation4], 1 }
 0x1f9   :  { %211 = vsyncpa [#allocation5], 1 }

</bundles_post_ra>
